<compile_context>
chip_gen: v7x
topology: tpu7x:2x2x1
jax: 0.10.0
libtpu: 0.0.40
codegen_flags: <defaults>
</compile_context>

<pallas_src>
import random

import numpy as np
import jax
import jax.numpy as jnp
from jax.experimental import pallas as pl
from jax.experimental.pallas import tpu as pltpu


# --------------------------------------------------------------------------
# Host-side segment bookkeeping (replica of random_segmentation's RNG logic)
# --------------------------------------------------------------------------
def _random_segments(T: int, seed: int):
    """Deterministic replica of the module's segment construction + shuffle.

    Returns a list of (src_start, length) in the shuffled (output) order.
    NOTE: the seed/T bake the plan at trace time (host `random`, same as the
    torch module's host-side RNG); a new seed per call retraces.
    """
    rng = random.Random(seed)
    min_length = max(1, int(T * 0.1))
    max_length = int(T * 0.25)
    segments = []
    start = 0
    while start < T:
        hi = min(max_length, T - start)
        if hi >= min_length:
            length = rng.randint(min_length, hi)
        else:
            # The torch reference calls randint(lo, hi) with hi < lo here and
            # raises; we take the remainder instead so every T is legal.
            length = max(1, hi)
        segments.append((start, length))
        start += length
    rng.shuffle(segments)
    return segments


def random_segmentation_perm(T: int, seed: int = 0) -> np.ndarray:
    """Time permutation implied by the shuffled segments: out[t] = x[perm[t]]."""
    perm = []
    for s, length in _random_segments(T, seed):
        perm.extend(range(s, s + length))
    return np.asarray(perm, dtype=np.int32)


def _build_copy_plan(T: int, seed: int):
    """One (src_start, dst_start, length) triple per shuffled segment.

    Destinations are non-overlapping and exactly cover [0, T): no WAW races.
    """
    plan = []
    dst = 0
    for s, length in _random_segments(T, seed):
        plan.append((s, dst, length))
        dst += length
    assert dst == T
    return tuple(plan)


# --------------------------------------------------------------------------
# Pallas kernel: static per-segment slice copies inside VMEM.
#   x_ref / o_ref : (rows, T) VMEM blocks (auto-DMA'd by BlockSpec).
# The plan is a trace-time constant, so this unrolls into a handful of
# vector load/store sequences — no semaphores, no scalar reads, no grid
# bookkeeping beyond the (optional) row tiling.
# --------------------------------------------------------------------------
def _make_segment_copy_kernel(plan):
    def kernel(x_ref, o_ref):
        for src, dst, length in plan:
            o_ref[:, dst:dst + length] = x_ref[:, src:src + length]
    return kernel


# --------------------------------------------------------------------------
# Wrapper
# --------------------------------------------------------------------------
def sequence_perturbation_random(x: jax.Array, seed: int = 0,
                                 row_block: int | None = None) -> jax.Array:
    """Pallas/TPU equivalent of SequencePerturbation(method='random')(x).

    x: (C, F, T) spectrogram.  Returns the time-segment-shuffled array of the
    same shape.  `row_block` optionally forces the C*F tiling (testing only).
    """
    C, F, T = x.shape
    CF = C * F
    plan = _build_copy_plan(T, seed)
    kernel = _make_segment_copy_kernel(plan)

    # Free relayout: (C, F, T) -> (C*F, T) collapses adjacent major dims,
    # same physical layout, no HBM pass (unlike the previous transposes).
    x2d = x.reshape(CF, T)

    itemsize = jnp.dtype(x.dtype).itemsize
    row_bytes = T * itemsize
    array_bytes = CF * row_bytes

    # Physical VMEM of the current generation (64 MiB on v7x, 128 MiB v5e/v6e).
    try:
        vmem_cap = int(pltpu.get_tpu_info().vmem_capacity_bytes)
    except Exception:  # conservative floor if the query is unavailable
        vmem_cap = 64 * 1024 * 1024

    # Safe budget for (input block + output block) incl. pipeline buffers.
    budget = (vmem_cap * 3) // 8

    if row_block is not None:
        rows = max(1, min(CF, row_block))
    elif array_bytes <= budget:
        rows = CF                              # single-shot: whole array in VMEM
    else:
        # Tile the C*F axis; each block still spans the full T extent.
        rows = (budget // (4 * row_bytes)) // 8 * 8
        rows = max(8, min(CF, rows))
        # TODO(synk): if even 8 rows * T don't fit VMEM (absurdly long T),
        # a T-tiled per-segment DMA path would be needed.

    # Full-extent blocks are exempt from the (8,128) rule; otherwise keep the
    # row dim a multiple of 8 (sublane) — T is always the full lane extent.
    if rows != CF:
        rows = max(8, (rows // 8) * 8)

    grid = (pl.cdiv(CF, rows),)

    # VMEM limit: enough for in+out blocks (double-buffered) + headroom,
    # never above physical capacity.
    vmem_limit = int(min(vmem_cap - (2 << 20),
                         max(32 << 20, 4 * rows * row_bytes + (4 << 20))))

    out2d = pl.pallas_call(
        kernel,
        out_shape=jax.ShapeDtypeStruct((CF, T), x.dtype),
        grid=grid,
        in_specs=[pl.BlockSpec((rows, T), lambda i: (i, 0))],
        out_specs=pl.BlockSpec((rows, T), lambda i: (i, 0)),
        compiler_params=pltpu.CompilerParams(
            # Row blocks are fully independent -> megacore-splittable on v7x.
            dimension_semantics=("parallel",),
            vmem_limit_bytes=vmem_limit,
        ),
    )(x2d)

    return out2d.reshape(C, F, T)


if __name__ == "__main__":
    seed = 0

    # Small deterministic input consistent with the module's (C, F, T) input.
    C, F, T = 2, 8, 32
    x = jax.random.normal(jax.random.PRNGKey(0), (C, F, T), dtype=jnp.float32)
    out = jax.block_until_ready(sequence_perturbation_random(x, seed=seed))
    assert out.shape == (C, F, T)
    perm = random_segmentation_perm(T, seed=seed)
    ref = np.asarray(x)[:, :, perm]
    np.testing.assert_array_equal(np.asarray(out), ref)

    # A spectrogram-like shape exercising multi-segment shuffles (single-shot path).
    C2, F2, T2 = 1, 80, 400
    x2 = jax.random.normal(jax.random.PRNGKey(1), (C2, F2, T2), dtype=jnp.float32)
    out2 = jax.block_until_ready(sequence_perturbation_random(x2, seed=seed))
    perm2 = random_segmentation_perm(T2, seed=seed)
    ref2 = np.asarray(x2)[:, :, perm2]
    np.testing.assert_array_equal(np.asarray(out2), ref2)

    # Exercise the row-tiled (large-array fallback) path cheaply by forcing a
    # small row block: CF=80 -> grid of 10 independent (8, T) blocks.
    out3 = jax.block_until_ready(
        sequence_perturbation_random(x2, seed=seed, row_block=8))
    np.testing.assert_array_equal(np.asarray(out3), ref2)

    print("KERNEL_OK")
</pallas_src>

<mosaic_0001>
module attributes {stable_mosaic.version = 11 : i64} {
  func.func @kernel(%arg0: i32, %arg1: memref<16x32xf32, #tpu.memory_space<vmem>>, %arg2: memref<16x32xf32, #tpu.memory_space<vmem>>) attributes {dimension_semantics = [#tpu.dimension_semantics<parallel>], iteration_bounds = array<i64: 1>, scalar_prefetch = 0 : i64, scratch_operands = 0 : i64, tpu.core_type = #tpu.core_type<tc>, window_params = [{transform_indices = @transform_0, window_bounds = array<i64: 16, 32>}, {transform_indices = @transform_1, window_bounds = array<i64: 16, 32>}]} {
    %c0 = arith.constant 0 : index
    %c6 = arith.constant 6 : index
    %0 = vector.load %arg1[%c0, %c6] : memref<16x32xf32, #tpu.memory_space<vmem>>, vector<16x6xf32>
    %c0_0 = arith.constant 0 : index
    %c0_1 = arith.constant 0 : index
    %1 = vector.load %arg2[%c0_0, %c0_1] : memref<16x32xf32, #tpu.memory_space<vmem>>, vector<16x6xf32>
    tpu.vector_store %arg2[%c0_0, %c0_1], %0 {strides = array<i32>} : memref<16x32xf32, #tpu.memory_space<vmem>>, vector<16x6xf32>,
    %c0_2 = arith.constant 0 : index
    %c0_3 = arith.constant 0 : index
    %2 = vector.load %arg1[%c0_2, %c0_3] : memref<16x32xf32, #tpu.memory_space<vmem>>, vector<16x6xf32>
    %c0_4 = arith.constant 0 : index
    %c6_5 = arith.constant 6 : index
    %3 = vector.load %arg2[%c0_4, %c6_5] : memref<16x32xf32, #tpu.memory_space<vmem>>, vector<16x6xf32>
    tpu.vector_store %arg2[%c0_4, %c6_5], %2 {strides = array<i32>} : memref<16x32xf32, #tpu.memory_space<vmem>>, vector<16x6xf32>,
    %c0_6 = arith.constant 0 : index
    %c20 = arith.constant 20 : index
    %4 = vector.load %arg1[%c0_6, %c20] : memref<16x32xf32, #tpu.memory_space<vmem>>, vector<16x7xf32>
    %c0_7 = arith.constant 0 : index
    %c12 = arith.constant 12 : index
    %5 = vector.load %arg2[%c0_7, %c12] : memref<16x32xf32, #tpu.memory_space<vmem>>, vector<16x7xf32>
    tpu.vector_store %arg2[%c0_7, %c12], %4 {strides = array<i32>} : memref<16x32xf32, #tpu.memory_space<vmem>>, vector<16x7xf32>,
    %c0_8 = arith.constant 0 : index
    %c27 = arith.constant 27 : index
    %6 = vector.load %arg1[%c0_8, %c27] : memref<16x32xf32, #tpu.memory_space<vmem>>, vector<16x4xf32>
    %c0_9 = arith.constant 0 : index
    %c19 = arith.constant 19 : index
    %7 = vector.load %arg2[%c0_9, %c19] : memref<16x32xf32, #tpu.memory_space<vmem>>, vector<16x4xf32>
    tpu.vector_store %arg2[%c0_9, %c19], %6 {strides = array<i32>} : memref<16x32xf32, #tpu.memory_space<vmem>>, vector<16x4xf32>,
    %c0_10 = arith.constant 0 : index
    %c31 = arith.constant 31 : index
    %8 = vector.load %arg1[%c0_10, %c31] : memref<16x32xf32, #tpu.memory_space<vmem>>, vector<16x1xf32>
    %c0_11 = arith.constant 0 : index
    %c23 = arith.constant 23 : index
    %9 = vector.load %arg2[%c0_11, %c23] : memref<16x32xf32, #tpu.memory_space<vmem>>, vector<16x1xf32>
    tpu.vector_store %arg2[%c0_11, %c23], %8 {strides = array<i32>} : memref<16x32xf32, #tpu.memory_space<vmem>>, vector<16x1xf32>,
    %c0_12 = arith.constant 0 : index
    %c12_13 = arith.constant 12 : index
    %10 = vector.load %arg1[%c0_12, %c12_13] : memref<16x32xf32, #tpu.memory_space<vmem>>, vector<16x3xf32>
    %c0_14 = arith.constant 0 : index
    %c24 = arith.constant 24 : index
    %11 = vector.load %arg2[%c0_14, %c24] : memref<16x32xf32, #tpu.memory_space<vmem>>, vector<16x3xf32>
    tpu.vector_store %arg2[%c0_14, %c24], %10 {strides = array<i32>} : memref<16x32xf32, #tpu.memory_space<vmem>>, vector<16x3xf32>,
    %c0_15 = arith.constant 0 : index
    %c15 = arith.constant 15 : index
    %12 = vector.load %arg1[%c0_15, %c15] : memref<16x32xf32, #tpu.memory_space<vmem>>, vector<16x5xf32>
    %c0_16 = arith.constant 0 : index
    %c27_17 = arith.constant 27 : index
    %13 = vector.load %arg2[%c0_16, %c27_17] : memref<16x32xf32, #tpu.memory_space<vmem>>, vector<16x5xf32>
    tpu.vector_store %arg2[%c0_16, %c27_17], %12 {strides = array<i32>} : memref<16x32xf32, #tpu.memory_space<vmem>>, vector<16x5xf32>,
    return
  }
  func.func @transform_0(%arg0: i32) -> (i32, i32) {
    %c0_i32 = arith.constant 0 : i32
    %c0_i32_0 = arith.constant 0 : i32
    return %arg0, %c0_i32 : i32, i32
  }
  func.func @transform_1(%arg0: i32) -> (i32, i32) {
    %c0_i32 = arith.constant 0 : i32
    %c0_i32_0 = arith.constant 0 : i32
    return %arg0, %c0_i32 : i32, i32
  }
}

</mosaic_0001>

<bundles_post_ra>
// kernel: tpu_custom_call.1
= control target key start
LH: loop header
LB: loop body
LE: loop exit
PB: predicated region body
PF: predicated region fallthrough
CT: control target
= control target key end

     0   :  { %6 = vsyncpa [#allocation3], 0  ;;  %s235_s0 = inlined_call_operand.hbm [shape: f32[16,32], index: 0, kind: input, shape index: {}]   ;;  %s236_s1 = inlined_call_operand.hbm [shape: f32[16,32], index: 1, kind: output, shape index: {}]  }
   0x1   :  { %7 = vsyncpa [#allocation4], 0  ;;  %s187_s6 = smov [#allocation2]   ;;  %s139_s10 = scalar_lea.hbm %s235_s0, 256 }
   0x2   :  { %s13_s7 = sshll.u32 %s187_s6, 4  ;;  %p140_p0 = scmp.ne.s32.totalorder %s235_s0, %s139_s10  ;;  %s14_s7 = int_to_ptr.vmem [resolvable:$true] %s13_s7 }
   0x3   :  { %p143_p1 = scmp.lt.u32.totalorder %s139_s10, %s235_s0 }
   0x5   :  { %p145_p2 = pnand %p143_p1, %p140_p0 }
   0x7   :  { %148 = shalt.err (!%p145_p2)
}
   0x8   :  { %s149_s15 = scalar_lea.vmem %s14_s7, 256  ;;  %p154_p4 = scmp.lt.s32.totalorder %s14_s7, %s14_s7 }
   0x9   :  { %p150_p3 = scmp.ne.s32.totalorder %s14_s7, %s149_s15  ;;  %p155_p5 = scmp.lt.s32.totalorder %s149_s15, %s149_s15 }
   0xb   :  { %p156_p6 = por %p155_p5, %p154_p4 }
   0xd   :  { %p157_p7 = pnand %p156_p6, %p150_p3 }
   0xf   :  { %160 = shalt.err (!%p157_p7)
}
  0x10   :  { %s188_s16 = smov 128   ;;  %s189_s17 = smov 8  }
  0x11   :  { %19 = dma.hbm_to_vmem [thread:$0]  %s235_s0, 256, %s14_s7, [#allocation3], %s188_s16, %s188_s16, %s189_s17  }
  0x12   :  { %183 = dma.done.wait [#allocation3], 256  }
  0x13   :  { %184 = vsyncadd [#allocation3], 4294967040  ;;  %v36_v0 = vld [vmem:[#allocation2] sm:$0xff]  ;;  %s190_s20 = smov 6   ;;  %s191_s21 = smov 122   ;;  %v37_v1 = vld [vmem:[#allocation2 + $0x8] sm:$0xff] }
  0x14   :  { %40 = vrot.lane.b32.xlu1 %v36_v0, %s190_s20  ;;  %27 = vrot.lane.b32.xlu0 %v36_v0, %s191_s21  ;;  %s192_s22 = smov 120   ;;  %s193_s23 = smov 12   ;;  %vm33_vm0 = vcmask 48128   ;;  %vm46_vm1 = vcmask 97328   ;;  %vm59_vm2 = vcmask 154720   ;;  %vm72_vm3 = vcmask 187544  }
  0x15   :  { %vm85_vm4 = vcmask 195768   ;;  %vm98_vm5 = vcmask 220352   ;;  %s194_s0 = smov [#allocation5]   ;;  %vm111_vm6 = vcmask 261336  }
  0x16   :  { %s119_s24 = sshll.u32 %s194_s0, 4  ;;  %s120_s24 = int_to_ptr.vmem [resolvable:$true] %s119_s24 }
  0x17   :  { %s161_s25 = scalar_lea.vmem %s120_s24, 256  ;;  %p166_p9 = scmp.lt.s32.totalorder %s120_s24, %s120_s24 }
  0x18   :  { %42 = vrot.lane.b32.xlu1 %v37_v1, %s190_s20  ;;  %29 = vrot.lane.b32.xlu0 %v37_v1, %s191_s21  ;;  %p162_p8 = scmp.ne.s32.totalorder %s120_s24, %s161_s25  ;;  %p167_p10 = scmp.lt.s32.totalorder %s161_s25, %s161_s25 }
  0x1a   :  { %p168_p11 = por %p167_p10, %p166_p9 }
  0x1c   :  { %55 = vrot.lane.b32.xlu1 %v37_v1, %s192_s22  ;;  %53 = vrot.lane.b32.xlu0 %v36_v0, %s192_s22  ;;  %p169_p12 = pnand %p168_p11, %p162_p8 }
  0x20   :  { %68 = vrot.lane.b32.xlu1 %v37_v1, %s192_s22  ;;  %66 = vrot.lane.b32.xlu0 %v36_v0, %s192_s22 }
  0x24   :  { %81 = vrot.lane.b32.xlu1 %v37_v1, %s192_s22  ;;  %79 = vrot.lane.b32.xlu0 %v36_v0, %s192_s22 }
  0x28   :  { %94 = vrot.lane.b32.xlu1 %v37_v1, %s193_s23  ;;  %92 = vrot.lane.b32.xlu0 %v36_v0, %s193_s23 }
  0x2c   :  { %107 = vrot.lane.b32.xlu1 %v37_v1, %s193_s23  ;;  %105 = vrot.lane.b32.xlu0 %v36_v0, %s193_s23 }
  0x86   :  { %v41_v2 = vpop.permute.xlu1 %40  ;;  %v28_v3 = vpop.permute.xlu0 %27 }
  0x87   :  { %34 = vst.msk [vmem:[#allocation5] sm:$0xff] %vm33_vm0, %v28_v3 }
  0x88   :  { %47 = vst.msk [vmem:[#allocation5] sm:$0xff] %vm46_vm1, %v41_v2 }
  0x8a   :  { %v43_v4 = vpop.permute.xlu1 %42  ;;  %v30_v5 = vpop.permute.xlu0 %29 }
  0x8b   :  { %35 = vst.msk [vmem:[#allocation5 + $0x8] sm:$0xff] %vm33_vm0, %v30_v5 }
  0x8c   :  { %48 = vst.msk [vmem:[#allocation5 + $0x8] sm:$0xff] %vm46_vm1, %v43_v4 }
  0x8e   :  { %v56_v6 = vpop.permute.xlu1 %55  ;;  %v54_v7 = vpop.permute.xlu0 %53 }
  0x8f   :  { %61 = vst.msk [vmem:[#allocation5 + $0x8] sm:$0xff] %vm59_vm2, %v56_v6  ;;  %60 = vst.msk [vmem:[#allocation5] sm:$0xff] %vm59_vm2, %v54_v7 }
  0x92   :  { %v69_v8 = vpop.permute.xlu1 %68  ;;  %v67_v9 = vpop.permute.xlu0 %66 }
  0x93   :  { %74 = vst.msk [vmem:[#allocation5 + $0x8] sm:$0xff] %vm72_vm3, %v69_v8  ;;  %73 = vst.msk [vmem:[#allocation5] sm:$0xff] %vm72_vm3, %v67_v9 }
  0x96   :  { %v82_v10 = vpop.permute.xlu1 %81  ;;  %v80_v11 = vpop.permute.xlu0 %79 }
  0x97   :  { %87 = vst.msk [vmem:[#allocation5 + $0x8] sm:$0xff] %vm85_vm4, %v82_v10  ;;  %86 = vst.msk [vmem:[#allocation5] sm:$0xff] %vm85_vm4, %v80_v11 }
  0x9a   :  { %v95_v12 = vpop.permute.xlu1 %94  ;;  %v93_v13 = vpop.permute.xlu0 %92 }
  0x9b   :  { %100 = vst.msk [vmem:[#allocation5 + $0x8] sm:$0xff] %vm98_vm5, %v95_v12  ;;  %99 = vst.msk [vmem:[#allocation5] sm:$0xff] %vm98_vm5, %v93_v13 }
  0x9e   :  { %v108_v14 = vpop.permute.xlu1 %107  ;;  %v106_v15 = vpop.permute.xlu0 %105 }
  0x9f   :  { %112 = vst.msk [vmem:[#allocation5] sm:$0xff] %vm111_vm6, %v106_v15  ;;  %113 = vst.msk [vmem:[#allocation5 + $0x8] sm:$0xff] %vm111_vm6, %v108_v14 }
  0xa0   :  { %172 = shalt.err (!%p169_p12)
}
  0xa1   :  { %s173_s28 = scalar_lea.hbm %s236_s1, 256 }
  0xa2   :  { %p174_p13 = scmp.ne.s32.totalorder %s236_s1, %s173_s28  ;;  %p177_p0 = scmp.lt.u32.totalorder %s173_s28, %s236_s1 }
  0xa4   :  { %p179_p1 = pnand %p177_p0, %p174_p13 }
  0xa6   :  { %182 = shalt.err (!%p179_p1)
}
  0xa7   :  { %125 = dma.vmem_to_hbm [thread:$0]  %s120_s24, 256, %s236_s1, [#allocation4], %s188_s16, %s188_s16, %s189_s17  }
  0xa8   :  { %185 = dma.done.wait [#allocation4], 256  }
  0xa9   :  { %186 = vsyncadd [#allocation4], 4294967040 }
  0xaa   :  { %129 = vsyncpa [#allocation3], 1 }
  0xab   :  { %130 = vsyncpa [#allocation4], 1 }

</bundles_post_ra>
